<compile_context>
chip_gen: v6e
topology: v6e:2x2x1
jax: 0.10.0
libtpu: 0.0.40
codegen_flags: <defaults>
</compile_context>

<pallas_src>
import functools
import math

import jax
import jax.numpy as jnp
from jax.experimental import pallas as pl
from jax.experimental.pallas import tpu as pltpu


def _round_up(x, m):
    return (x + m - 1) // m * m


# ----------------------------------------------------------------------------- kernels


def _twin_q_kernel_split(s_ref, a_ref, w1_ref, b1_ref, w2_ref, b2_ref,
                         w3_ref, b3_ref, q_ref, x_ref, *, S, A, H):
    """H % 128 == 0 path: per-net layer-2 dots on lane-aligned halves."""
    # Lane-concat state/action into the scratch LHS (two sub-tile stores), so
    # layer 1 is a single K=(S+A) MXU contraction instead of two dots.
    x_ref[:, :S] = s_ref[...]
    x_ref[:, S:S + A] = a_ref[...]
    h1 = jnp.maximum(
        jnp.dot(x_ref[...], w1_ref[...], preferred_element_type=jnp.float32)
        + b1_ref[...], 0.0)
    # Layer 2: two per-net dots (half the MXU passes / w2 footprint of the
    # block-diagonal form).  Slices at H are lane-aligned since H % 128 == 0.
    h2a = jnp.maximum(
        jnp.dot(h1[:, :H], w2_ref[0], preferred_element_type=jnp.float32)
        + b2_ref[:, :H], 0.0)
    h2b = jnp.maximum(
        jnp.dot(h1[:, H:], w2_ref[1], preferred_element_type=jnp.float32)
        + b2_ref[:, H:], 0.0)
    # Layer 3: fused [tb, 2] head (q1 in lane 0, q2 in lane 1).
    q_ref[...] = (
        jnp.dot(h2a, w3_ref[:H, :], preferred_element_type=jnp.float32)
        + jnp.dot(h2b, w3_ref[H:, :], preferred_element_type=jnp.float32)
        + b3_ref[...])


def _twin_q_kernel_blockdiag(s_ref, a_ref, w1_ref, b1_ref, w2_ref, b2_ref,
                             w3_ref, b3_ref, q_ref, x_ref, *, S, A):
    """H < 128 path: zero-padded block-diagonal layer-2 fusion (single dot)."""
    x_ref[:, :S] = s_ref[...]
    x_ref[:, S:S + A] = a_ref[...]
    h1 = jnp.maximum(
        jnp.dot(x_ref[...], w1_ref[...], preferred_element_type=jnp.float32)
        + b1_ref[...], 0.0)
    h2 = jnp.maximum(
        jnp.dot(h1, w2_ref[...], preferred_element_type=jnp.float32)
        + b2_ref[...], 0.0)
    q_ref[...] = (
        jnp.dot(h2, w3_ref[...], preferred_element_type=jnp.float32)
        + b3_ref[...])


# ----------------------------------------------------------------------------- tiling / VMEM


def _cost_bytes(tb, S, A, H, Hf, split):
    """Conservative per-core VMEM estimate (weights counted double-buffered)."""
    w2_elems = 2 * H * H if split else Hf * Hf
    weights = ((S + A) * Hf + Hf + w2_elems + Hf + 2 * Hf + 2) * 4
    acts = (2 * tb * (S + A) + 2 * tb * 2 + tb * (S + A)) * 4  # dbl-buf in/out + concat scratch
    hidden = 3 * tb * Hf * 4                                   # h1/h2 temporaries (estimate)
    return 2 * weights + acts + hidden


def _pick_tile_and_vmem(Bp, S, A, H, Hf, split, max_tile_b):
    budget = 40 << 20          # keeps the kernel comfortable inside v7x's 64 MiB VMEM
    tb = min(_round_up(max(max_tile_b, 8), 8), Bp)
    while tb > 8 and _cost_bytes(tb, S, A, H, Hf, split) > budget:
        tb = max(_round_up(tb // 2, 8), 8)
    vmem_limit = int(min(max(_cost_bytes(tb, S, A, H, Hf, split) * 1.4 + (2 << 20),
                             16 << 20), 56 << 20))
    return tb, vmem_limit


# ----------------------------------------------------------------------------- wrapper


def critic_q_twin(state, action, fused, *, max_tile_b=2048):
    """state: [B, S] f32, action: [B, A] f32, fused: dict from fuse_params()."""
    B, S = state.shape
    A = action.shape[1]
    H = fused["H"]
    split = fused["split"]
    Hf = fused["b1"].shape[1]
    SA = S + A

    # Only pad batch to the 8-sublane granule (<=7 rows); partial trailing batch
    # tiles are handled by Pallas boundary masking, so no tile-size padding/copy.
    Bp = _round_up(B, 8)
    if Bp != B:
        state = jnp.pad(state, ((0, Bp - B), (0, 0)))
        action = jnp.pad(action, ((0, Bp - B), (0, 0)))

    tb, vmem_limit = _pick_tile_and_vmem(Bp, S, A, H, Hf, split, max_tile_b)
    grid = (pl.cdiv(Bp, tb),)

    if split:
        kernel = functools.partial(_twin_q_kernel_split, S=S, A=A, H=H)
        w2_shape, w2_map = (2, H, H), (lambda i: (0, 0, 0))
    else:
        kernel = functools.partial(_twin_q_kernel_blockdiag, S=S, A=A)
        w2_shape, w2_map = (Hf, Hf), (lambda i: (0, 0))

    row_map = lambda i: (i, 0)     # batch-tiled activations / output
    const_map = lambda i: (0, 0)   # weights/biases stay VMEM-resident

    def build_specs(single_buffer):
        kw = dict(pipeline_mode=pl.Buffered(1)) if single_buffer else {}
        return [
            pl.BlockSpec((tb, S), row_map),
            pl.BlockSpec((tb, A), row_map),
            pl.BlockSpec((SA, Hf), const_map, **kw),
            pl.BlockSpec((1, Hf), const_map, **kw),
            pl.BlockSpec(w2_shape, w2_map, **kw),
            pl.BlockSpec((1, Hf), const_map, **kw),
            pl.BlockSpec((Hf, 2), const_map, **kw),
            pl.BlockSpec((1, 2), const_map, **kw),
        ]

    def run(single_buffer):
        return pl.pallas_call(
            kernel,
            out_shape=jax.ShapeDtypeStruct((Bp, 2), jnp.float32),
            grid=grid,
            in_specs=build_specs(single_buffer),
            out_specs=pl.BlockSpec((tb, 2), row_map),
            scratch_shapes=[pltpu.VMEM((tb, SA), jnp.float32)],
            compiler_params=pltpu.CompilerParams(
                dimension_semantics=("parallel",),   # megacore sharding on v7x
                vmem_limit_bytes=vmem_limit,
            ),
        )(state, action,
          fused["w1"], fused["b1"], fused["w2"], fused["b2"],
          fused["w3"], fused["b3"])

    try:
        q = run(True)        # weights single-buffered (constant block index)
    except Exception:
        q = run(False)       # fallback if pl.Buffered(1) is unsupported here

    q = q[:B]
    return q[:, 0:1], q[:, 1:2]  # q1, q2 of shape [B, 1]


# ----------------------------------------------------------------------------- params


def init_params(key, state_dim, hidden_dim, action_dim):
    """Per-net params matching nn.Linear's U(-1/sqrt(fan_in), +) default init.

    Weights stored as [in, out] (transposed vs torch's [out, in]) so x @ w applies.
    """
    in_dim = state_dim + action_dim

    def linear(key, fan_in, fan_out):
        kw, kb = jax.random.split(key)
        bound = 1.0 / math.sqrt(fan_in)
        w = jax.random.uniform(kw, (fan_in, fan_out), jnp.float32, -bound, bound)
        b = jax.random.uniform(kb, (1, fan_out), jnp.float32, -bound, bound)
        return w, b

    keys = jax.random.split(key, 6)
    w1a, b1a = linear(keys[0], in_dim, hidden_dim)
    w2a, b2a = linear(keys[1], hidden_dim, hidden_dim)
    w3a, b3a = linear(keys[2], hidden_dim, 1)
    w1b, b1b = linear(keys[3], in_dim, hidden_dim)
    w2b, b2b = linear(keys[4], hidden_dim, hidden_dim)
    w3b, b3b = linear(keys[5], hidden_dim, 1)
    return dict(
        w1a=w1a, b1a=b1a, w2a=w2a, b2a=b2a, w3a=w3a, b3a=b3a,
        w1b=w1b, b1b=b1b, w2b=w2b, b2b=b2b, w3b=w3b, b3b=b3b,
    )


def fuse_params(p, state_dim, hidden_dim, action_dim):
    """Fuse net1/net2 into shared lane-aligned matmuls.

    If H % 128 == 0: per-net layout (Hf = 2H, w2 stacked [2, H, H]) so layer 2
    can run as two half-width dots.  Otherwise: zero-padded block-diagonal
    fusion (Hf = round_up(2H, 128)).  Both are bit-for-bit the same math as the
    unfused twin nets (zero lanes stay zero through ReLU and zero weight rows).
    """
    S, A, H = state_dim, action_dim, hidden_dim
    split = (H % 128 == 0)
    Hf = 2 * H if split else _round_up(2 * H, 128)

    w1 = jnp.zeros((S + A, Hf), jnp.float32)
    w1 = w1.at[:, :H].set(p["w1a"]).at[:, H:2 * H].set(p["w1b"])
    b1 = jnp.zeros((1, Hf), jnp.float32)
    b1 = b1.at[:, :H].set(p["b1a"]).at[:, H:2 * H].set(p["b1b"])

    if split:
        w2 = jnp.stack([p["w2a"], p["w2b"]], axis=0)           # [2, H, H]
    else:
        w2 = jnp.zeros((Hf, Hf), jnp.float32)
        w2 = w2.at[:H, :H].set(p["w2a"]).at[H:2 * H, H:2 * H].set(p["w2b"])
    b2 = jnp.zeros((1, Hf), jnp.float32)
    b2 = b2.at[:, :H].set(p["b2a"]).at[:, H:2 * H].set(p["b2b"])

    w3 = jnp.zeros((Hf, 2), jnp.float32)
    w3 = w3.at[:H, 0:1].set(p["w3a"]).at[H:2 * H, 1:2].set(p["w3b"])
    b3 = jnp.concatenate([p["b3a"], p["b3b"]], axis=1)          # [1, 2]

    return dict(w1=w1, b1=b1, w2=w2, b2=b2, w3=w3, b3=b3,
                split=split, H=H, S=S, A=A)


# ----------------------------------------------------------------------------- reference / demo


def reference(state, action, p):
    """Pure-JAX reference of the unfused twin-net math (mirrors the torch module)."""
    x = jnp.concatenate([state, action], axis=1)
    hp = jax.lax.Precision.HIGHEST

    def mlp(w1, b1, w2, b2, w3, b3):
        h1 = jnp.maximum(jnp.dot(x, w1, precision=hp) + b1, 0.0)
        h2 = jnp.maximum(jnp.dot(h1, w2, precision=hp) + b2, 0.0)
        return jnp.dot(h2, w3, precision=hp) + b3

    return (
        mlp(p["w1a"], p["b1a"], p["w2a"], p["b2a"], p["w3a"], p["b3a"]),
        mlp(p["w1b"], p["b1b"], p["w2b"], p["b2b"], p["w3b"], p["b3b"]),
    )


if __name__ == "__main__":
    def check(batch, state_dim, action_dim, hidden, key, **kw):
        ks, ka, kp = jax.random.split(key, 3)
        state = jax.random.normal(ks, (batch, state_dim), jnp.float32)
        action = jax.random.normal(ka, (batch, action_dim), jnp.float32)
        params = init_params(kp, state_dim, hidden, action_dim)
        fused = fuse_params(params, state_dim, hidden, action_dim)
        q1, q2 = critic_q_twin(state, action, fused, **kw)
        jax.block_until_ready((q1, q2))
        r1, r2 = reference(state, action, params)
        assert q1.shape == (batch, 1) and q2.shape == (batch, 1)
        assert jnp.allclose(q1, r1, atol=2e-4, rtol=2e-4), float(jnp.max(jnp.abs(q1 - r1)))
        assert jnp.allclose(q2, r2, atol=2e-4, rtol=2e-4), float(jnp.max(jnp.abs(q2 - r2)))

    root = jax.random.PRNGKey(0)
    k_small, k_large = jax.random.split(root)

    # Small demo shapes (block-diagonal layer-2 path, B < 8 sublane padding).
    check(2, 16, 4, 32, k_small)

    # Module's hidden_dim=256 (split layer-2 path), multi-tile grid with a
    # partial trailing batch tile handled by boundary masking (no batch pad).
    check(600, 8, 2, 256, k_large, max_tile_b=256)

    print("KERNEL_OK")
</pallas_src>

<mosaic_0001>
module attributes {stable_mosaic.version = 11 : i64} {
  func.func @_twin_q_kernel_blockdiag(%arg0: i32, %arg1: memref<8x16xf32, #tpu.memory_space<vmem>>, %arg2: memref<8x4xf32, #tpu.memory_space<vmem>>, %arg3: memref<20x128xf32, #tpu.memory_space<vmem>>, %arg4: memref<1x128xf32, #tpu.memory_space<vmem>>, %arg5: memref<128x128xf32, #tpu.memory_space<vmem>>, %arg6: memref<1x128xf32, #tpu.memory_space<vmem>>, %arg7: memref<128x2xf32, #tpu.memory_space<vmem>>, %arg8: memref<1x2xf32, #tpu.memory_space<vmem>>, %arg9: memref<8x2xf32, #tpu.memory_space<vmem>>, %arg10: memref<8x20xf32, #tpu.memory_space<vmem>>) attributes {dimension_semantics = [#tpu.dimension_semantics<parallel>], iteration_bounds = array<i64: 1>, scalar_prefetch = 0 : i64, scratch_operands = 1 : i64, tpu.core_type = #tpu.core_type<tc>, window_params = [{transform_indices = @transform_0, window_bounds = array<i64: 8, 16>}, {transform_indices = @transform_1, window_bounds = array<i64: 8, 4>}, {pipeline_mode = #tpu.pipeline_mode<synchronous>, transform_indices = @transform_2, window_bounds = array<i64: 20, 128>}, {pipeline_mode = #tpu.pipeline_mode<synchronous>, transform_indices = @transform_3, window_bounds = array<i64: 1, 128>}, {pipeline_mode = #tpu.pipeline_mode<synchronous>, transform_indices = @transform_4, window_bounds = array<i64: 128, 128>}, {pipeline_mode = #tpu.pipeline_mode<synchronous>, transform_indices = @transform_5, window_bounds = array<i64: 1, 128>}, {pipeline_mode = #tpu.pipeline_mode<synchronous>, transform_indices = @transform_6, window_bounds = array<i64: 128, 2>}, {pipeline_mode = #tpu.pipeline_mode<synchronous>, transform_indices = @transform_7, window_bounds = array<i64: 1, 2>}, {transform_indices = @transform_8, window_bounds = array<i64: 8, 2>}]} {
    %c0 = arith.constant 0 : index
    %c0_0 = arith.constant 0 : index
    %0 = vector.load %arg1[%c0, %c0_0] : memref<8x16xf32, #tpu.memory_space<vmem>>, vector<8x16xf32>
    %c0_1 = arith.constant 0 : index
    %c0_2 = arith.constant 0 : index
    %1 = vector.load %arg10[%c0_1, %c0_2] : memref<8x20xf32, #tpu.memory_space<vmem>>, vector<8x16xf32>
    tpu.vector_store %arg10[%c0_1, %c0_2], %0 {strides = array<i32>} : memref<8x20xf32, #tpu.memory_space<vmem>>, vector<8x16xf32>,
    %c0_3 = arith.constant 0 : index
    %c0_4 = arith.constant 0 : index
    %2 = vector.load %arg2[%c0_3, %c0_4] : memref<8x4xf32, #tpu.memory_space<vmem>>, vector<8x4xf32>
    %c0_5 = arith.constant 0 : index
    %c16 = arith.constant 16 : index
    %3 = vector.load %arg10[%c0_5, %c16] : memref<8x20xf32, #tpu.memory_space<vmem>>, vector<8x4xf32>
    tpu.vector_store %arg10[%c0_5, %c16], %2 {strides = array<i32>} : memref<8x20xf32, #tpu.memory_space<vmem>>, vector<8x4xf32>,
    %c0_6 = arith.constant 0 : index
    %c0_7 = arith.constant 0 : index
    %4 = vector.load %arg10[%c0_6, %c0_7] : memref<8x20xf32, #tpu.memory_space<vmem>>, vector<8x20xf32>
    %c0_8 = arith.constant 0 : index
    %c0_9 = arith.constant 0 : index
    %5 = vector.load %arg3[%c0_8, %c0_9] : memref<20x128xf32, #tpu.memory_space<vmem>>, vector<20x128xf32>
    %cst = arith.constant dense<0.000000e+00> : vector<8x128xf32>
    %6 = tpu.matmul %4, %5, %cst {dimension_numbers = #tpu.dot_dimension_numbers<[1], [0], [0], [1], [0, 0, 1, 1], [], []>} : vector<8x20xf32>, vector<20x128xf32>, vector<8x128xf32> -> vector<8x128xf32>
    %c0_10 = arith.constant 0 : index
    %c0_11 = arith.constant 0 : index
    %7 = vector.load %arg4[%c0_10, %c0_11] : memref<1x128xf32, #tpu.memory_space<vmem>>, vector<1x128xf32>
    %8 = vector.broadcast %7 : vector<1x128xf32> to vector<8x128xf32>
    %9 = arith.addf %6, %8 : vector<8x128xf32>
    %cst_12 = arith.constant 0.000000e+00 : f32
    %10 = vector.broadcast %cst_12 : f32 to vector<8x128xf32>
    %11 = arith.maximumf %9, %10 : vector<8x128xf32>
    %c0_13 = arith.constant 0 : index
    %c0_14 = arith.constant 0 : index
    %12 = vector.load %arg5[%c0_13, %c0_14] : memref<128x128xf32, #tpu.memory_space<vmem>>, vector<128x128xf32>
    %cst_15 = arith.constant dense<0.000000e+00> : vector<8x128xf32>
    %13 = tpu.matmul %11, %12, %cst_15 {dimension_numbers = #tpu.dot_dimension_numbers<[1], [0], [0], [1], [0, 0, 1, 1], [], []>} : vector<8x128xf32>, vector<128x128xf32>, vector<8x128xf32> -> vector<8x128xf32>
    %c0_16 = arith.constant 0 : index
    %c0_17 = arith.constant 0 : index
    %14 = vector.load %arg6[%c0_16, %c0_17] : memref<1x128xf32, #tpu.memory_space<vmem>>, vector<1x128xf32>
    %15 = vector.broadcast %14 : vector<1x128xf32> to vector<8x128xf32>
    %16 = arith.addf %13, %15 : vector<8x128xf32>
    %cst_18 = arith.constant 0.000000e+00 : f32
    %17 = vector.broadcast %cst_18 : f32 to vector<8x128xf32>
    %18 = arith.maximumf %16, %17 : vector<8x128xf32>
    %c0_19 = arith.constant 0 : index
    %c0_20 = arith.constant 0 : index
    %19 = vector.load %arg7[%c0_19, %c0_20] : memref<128x2xf32, #tpu.memory_space<vmem>>, vector<128x2xf32>
    %cst_21 = arith.constant dense<0.000000e+00> : vector<8x2xf32>
    %20 = tpu.matmul %18, %19, %cst_21 {dimension_numbers = #tpu.dot_dimension_numbers<[1], [0], [0], [1], [0, 0, 1, 1], [], []>} : vector<8x128xf32>, vector<128x2xf32>, vector<8x2xf32> -> vector<8x2xf32>
    %c0_22 = arith.constant 0 : index
    %c0_23 = arith.constant 0 : index
    %21 = vector.load %arg8[%c0_22, %c0_23] : memref<1x2xf32, #tpu.memory_space<vmem>>, vector<1x2xf32>
    %22 = vector.broadcast %21 : vector<1x2xf32> to vector<8x2xf32>
    %23 = arith.addf %20, %22 : vector<8x2xf32>
    %c0_24 = arith.constant 0 : index
    %c0_25 = arith.constant 0 : index
    %24 = vector.load %arg9[%c0_24, %c0_25] : memref<8x2xf32, #tpu.memory_space<vmem>>, vector<8x2xf32>
    tpu.vector_store %arg9[%c0_24, %c0_25], %23 {strides = array<i32>} : memref<8x2xf32, #tpu.memory_space<vmem>>, vector<8x2xf32>,
    return
  }
  func.func @transform_0(%arg0: i32) -> (i32, i32) {
    %c0_i32 = arith.constant 0 : i32
    %c0_i32_0 = arith.constant 0 : i32
    return %arg0, %c0_i32 : i32, i32
  }
  func.func @transform_1(%arg0: i32) -> (i32, i32) {
    %c0_i32 = arith.constant 0 : i32
    %c0_i32_0 = arith.constant 0 : i32
    return %arg0, %c0_i32 : i32, i32
  }
  func.func @transform_2(%arg0: i32) -> (i32, i32) {
    %c0_i32 = arith.constant 0 : i32
    %c0_i32_0 = arith.constant 0 : i32
    %c0_i32_1 = arith.constant 0 : i32
    return %c0_i32, %c0_i32_0 : i32, i32
  }
  func.func @transform_3(%arg0: i32) -> (i32, i32) {
    %c0_i32 = arith.constant 0 : i32
    %c0_i32_0 = arith.constant 0 : i32
    %c0_i32_1 = arith.constant 0 : i32
    return %c0_i32, %c0_i32_0 : i32, i32
  }
  func.func @transform_4(%arg0: i32) -> (i32, i32) {
    %c0_i32 = arith.constant 0 : i32
    %c0_i32_0 = arith.constant 0 : i32
    %c0_i32_1 = arith.constant 0 : i32
    return %c0_i32, %c0_i32_0 : i32, i32
  }
  func.func @transform_5(%arg0: i32) -> (i32, i32) {
    %c0_i32 = arith.constant 0 : i32
    %c0_i32_0 = arith.constant 0 : i32
    %c0_i32_1 = arith.constant 0 : i32
    return %c0_i32, %c0_i32_0 : i32, i32
  }
  func.func @transform_6(%arg0: i32) -> (i32, i32) {
    %c0_i32 = arith.constant 0 : i32
    %c0_i32_0 = arith.constant 0 : i32
    %c0_i32_1 = arith.constant 0 : i32
    return %c0_i32, %c0_i32_0 : i32, i32
  }
  func.func @transform_7(%arg0: i32) -> (i32, i32) {
    %c0_i32 = arith.constant 0 : i32
    %c0_i32_0 = arith.constant 0 : i32
    %c0_i32_1 = arith.constant 0 : i32
    return %c0_i32, %c0_i32_0 : i32, i32
  }
  func.func @transform_8(%arg0: i32) -> (i32, i32) {
    %c0_i32 = arith.constant 0 : i32
    %c0_i32_0 = arith.constant 0 : i32
    return %arg0, %c0_i32 : i32, i32
  }
}

module attributes {stable_mosaic.version = 11 : i64} {
  func.func @_twin_q_kernel_blockdiag(%arg0: i32, %arg1: memref<8x16xf32, #tpu.memory_space<vmem>>, %arg2: memref<8x4xf32, #tpu.memory_space<vmem>>, %arg3: memref<20x128xf32, #tpu.memory_space<vmem>>, %arg4: memref<1x128xf32, #tpu.memory_space<vmem>>, %arg5: memref<128x128xf32, #tpu.memory_space<vmem>>, %arg6: memref<1x128xf32, #tpu.memory_space<vmem>>, %arg7: memref<128x2xf32, #tpu.memory_space<vmem>>, %arg8: memref<1x2xf32, #tpu.memory_space<vmem>>, %arg9: memref<8x2xf32, #tpu.memory_space<vmem>>, %arg10: memref<8x20xf32, #tpu.memory_space<vmem>>) attributes {dimension_semantics = [#tpu.dimension_semantics<parallel>], iteration_bounds = array<i64: 1>, scalar_prefetch = 0 : i64, scratch_operands = 1 : i64, tpu.core_type = #tpu.core_type<tc>, window_params = [{transform_indices = @transform_0, window_bounds = array<i64: 8, 16>}, {transform_indices = @transform_1, window_bounds = array<i64: 8, 4>}, {pipeline_mode = #tpu.pipeline_mode<synchronous>, transform_indices = @transform_2, window_bounds = array<i64: 20, 128>}, {pipeline_mode = #tpu.pipeline_mode<synchronous>, transform_indices = @transform_3, window_bounds = array<i64: 1, 128>}, {pipeline_mode = #tpu.pipeline_mode<synchronous>, transform_indices = @transform_4, window_bounds = array<i64: 128, 128>}, {pipeline_mode = #tpu.pipeline_mode<synchronous>, transform_indices = @transform_5, window_bounds = array<i64: 1, 128>}, {pipeline_mode = #tpu.pipeline_mode<synchronous>, transform_indices = @transform_6, window_bounds = array<i64: 128, 2>}, {pipeline_mode = #tpu.pipeline_mode<synchronous>, transform_indices = @transform_7, window_bounds = array<i64: 1, 2>}, {transform_indices = @transform_8, window_bounds = array<i64: 8, 2>}]} {
    %c0 = arith.constant 0 : index
    %c0_0 = arith.constant 0 : index
    %0 = vector.load %arg1[%c0, %c0_0] : memref<8x16xf32, #tpu.memory_space<vmem>>, vector<8x16xf32>
    %c0_1 = arith.constant 0 : index
    %c0_2 = arith.constant 0 : index
    %1 = vector.load %arg10[%c0_1, %c0_2] : memref<8x20xf32, #tpu.memory_space<vmem>>, vector<8x16xf32>
    tpu.vector_store %arg10[%c0_1, %c0_2], %0 {strides = array<i32>} : memref<8x20xf32, #tpu.memory_space<vmem>>, vector<8x16xf32>,
    %c0_3 = arith.constant 0 : index
    %c0_4 = arith.constant 0 : index
    %2 = vector.load %arg2[%c0_3, %c0_4] : memref<8x4xf32, #tpu.memory_space<vmem>>, vector<8x4xf32>
    %c0_5 = arith.constant 0 : index
    %c16 = arith.constant 16 : index
    %3 = vector.load %arg10[%c0_5, %c16] : memref<8x20xf32, #tpu.memory_space<vmem>>, vector<8x4xf32>
    tpu.vector_store %arg10[%c0_5, %c16], %2 {strides = array<i32>} : memref<8x20xf32, #tpu.memory_space<vmem>>, vector<8x4xf32>,
    %c0_6 = arith.constant 0 : index
    %c0_7 = arith.constant 0 : index
    %4 = vector.load %arg10[%c0_6, %c0_7] : memref<8x20xf32, #tpu.memory_space<vmem>>, vector<8x20xf32>
    %c0_8 = arith.constant 0 : index
    %c0_9 = arith.constant 0 : index
    %5 = vector.load %arg3[%c0_8, %c0_9] : memref<20x128xf32, #tpu.memory_space<vmem>>, vector<20x128xf32>
    %cst = arith.constant dense<0.000000e+00> : vector<8x128xf32>
    %6 = tpu.matmul %4, %5, %cst {dimension_numbers = #tpu.dot_dimension_numbers<[1], [0], [0], [1], [0, 0, 1, 1], [], []>} : vector<8x20xf32>, vector<20x128xf32>, vector<8x128xf32> -> vector<8x128xf32>
    %c0_10 = arith.constant 0 : index
    %c0_11 = arith.constant 0 : index
    %7 = vector.load %arg4[%c0_10, %c0_11] : memref<1x128xf32, #tpu.memory_space<vmem>>, vector<1x128xf32>
    %8 = vector.broadcast %7 : vector<1x128xf32> to vector<8x128xf32>
    %9 = arith.addf %6, %8 : vector<8x128xf32>
    %cst_12 = arith.constant 0.000000e+00 : f32
    %10 = vector.broadcast %cst_12 : f32 to vector<8x128xf32>
    %11 = arith.maximumf %9, %10 : vector<8x128xf32>
    %c0_13 = arith.constant 0 : index
    %c0_14 = arith.constant 0 : index
    %12 = vector.load %arg5[%c0_13, %c0_14] : memref<128x128xf32, #tpu.memory_space<vmem>>, vector<128x128xf32>
    %cst_15 = arith.constant dense<0.000000e+00> : vector<8x128xf32>
    %13 = tpu.matmul %11, %12, %cst_15 {dimension_numbers = #tpu.dot_dimension_numbers<[1], [0], [0], [1], [0, 0, 1, 1], [], []>} : vector<8x128xf32>, vector<128x128xf32>, vector<8x128xf32> -> vector<8x128xf32>
    %c0_16 = arith.constant 0 : index
    %c0_17 = arith.constant 0 : index
    %14 = vector.load %arg6[%c0_16, %c0_17] : memref<1x128xf32, #tpu.memory_space<vmem>>, vector<1x128xf32>
    %15 = vector.broadcast %14 : vector<1x128xf32> to vector<8x128xf32>
    %16 = arith.addf %13, %15 : vector<8x128xf32>
    %cst_18 = arith.constant 0.000000e+00 : f32
    %17 = vector.broadcast %cst_18 : f32 to vector<8x128xf32>
    %18 = arith.maximumf %16, %17 : vector<8x128xf32>
    %c0_19 = arith.constant 0 : index
    %c0_20 = arith.constant 0 : index
    %19 = vector.load %arg7[%c0_19, %c0_20] : memref<128x2xf32, #tpu.memory_space<vmem>>, vector<128x2xf32>
    %cst_21 = arith.constant dense<0.000000e+00> : vector<8x2xf32>
    %20 = tpu.matmul %18, %19, %cst_21 {dimension_numbers = #tpu.dot_dimension_numbers<[1], [0], [0], [1], [0, 0, 1, 1], [], []>} : vector<8x128xf32>, vector<128x2xf32>, vector<8x2xf32> -> vector<8x2xf32>
    %c0_22 = arith.constant 0 : index
    %c0_23 = arith.constant 0 : index
    %21 = vector.load %arg8[%c0_22, %c0_23] : memref<1x2xf32, #tpu.memory_space<vmem>>, vector<1x2xf32>
    %22 = vector.broadcast %21 : vector<1x2xf32> to vector<8x2xf32>
    %23 = arith.addf %20, %22 : vector<8x2xf32>
    %c0_24 = arith.constant 0 : index
    %c0_25 = arith.constant 0 : index
    %24 = vector.load %arg9[%c0_24, %c0_25] : memref<8x2xf32, #tpu.memory_space<vmem>>, vector<8x2xf32>
    tpu.vector_store %arg9[%c0_24, %c0_25], %23 {strides = array<i32>} : memref<8x2xf32, #tpu.memory_space<vmem>>, vector<8x2xf32>,
    return
  }
  func.func @transform_0(%arg0: i32) -> (i32, i32) {
    %c0_i32 = arith.constant 0 : i32
    %c0_i32_0 = arith.constant 0 : i32
    return %arg0, %c0_i32 : i32, i32
  }
  func.func @transform_1(%arg0: i32) -> (i32, i32) {
    %c0_i32 = arith.constant 0 : i32
    %c0_i32_0 = arith.constant 0 : i32
    return %arg0, %c0_i32 : i32, i32
  }
  func.func @transform_2(%arg0: i32) -> (i32, i32) {
    %c0_i32 = arith.constant 0 : i32
    %c0_i32_0 = arith.constant 0 : i32
    %c0_i32_1 = arith.constant 0 : i32
    return %c0_i32, %c0_i32_0 : i32, i32
  }
  func.func @transform_3(%arg0: i32) -> (i32, i32) {
    %c0_i32 = arith.constant 0 : i32
    %c0_i32_0 = arith.constant 0 : i32
    %c0_i32_1 = arith.constant 0 : i32
    return %c0_i32, %c0_i32_0 : i32, i32
  }
  func.func @transform_4(%arg0: i32) -> (i32, i32) {
    %c0_i32 = arith.constant 0 : i32
    %c0_i32_0 = arith.constant 0 : i32
    %c0_i32_1 = arith.constant 0 : i32
    return %c0_i32, %c0_i32_0 : i32, i32
  }
  func.func @transform_5(%arg0: i32) -> (i32, i32) {
    %c0_i32 = arith.constant 0 : i32
    %c0_i32_0 = arith.constant 0 : i32
    %c0_i32_1 = arith.constant 0 : i32
    return %c0_i32, %c0_i32_0 : i32, i32
  }
  func.func @transform_6(%arg0: i32) -> (i32, i32) {
    %c0_i32 = arith.constant 0 : i32
    %c0_i32_0 = arith.constant 0 : i32
    %c0_i32_1 = arith.constant 0 : i32
    return %c0_i32, %c0_i32_0 : i32, i32
  }
  func.func @transform_7(%arg0: i32) -> (i32, i32) {
    %c0_i32 = arith.constant 0 : i32
    %c0_i32_0 = arith.constant 0 : i32
    %c0_i32_1 = arith.constant 0 : i32
    return %c0_i32, %c0_i32_0 : i32, i32
  }
  func.func @transform_8(%arg0: i32) -> (i32, i32) {
    %c0_i32 = arith.constant 0 : i32
    %c0_i32_0 = arith.constant 0 : i32
    return %arg0, %c0_i32 : i32, i32
  }
}

</mosaic_0001>

<bundles_post_ra>
// kernel: tpu_custom_call.1
= control target key start
LH: loop header
LB: loop body
LE: loop exit
PB: predicated region body
PF: predicated region fallthrough
CT: control target
= control target key end

     0   :  { %13 = vsyncpa [#allocation4], 0  ;;  %s487_s27 = smov [#allocation3]   ;;  %s696_s0 = inlined_call_operand.vmem [shape: f32[8,16], index: 0, kind: input, shape index: {}]   ;;  %s697_s1 = inlined_call_operand.vmem [shape: f32[8,4], index: 1, kind: input, shape index: {}]   ;;  %s698_s2 = inlined_call_operand.hbm [shape: f32[20,128], index: 2, kind: input, shape index: {}]   ;;  %s699_s3 = inlined_call_operand.vmem [shape: f32[1,128], index: 3, kind: input, shape index: {}]   ;;  %s700_s4 = inlined_call_operand.vmem [shape: f32[128,128], index: 4, kind: input, shape index: {}]   ;;  %s701_s5 = inlined_call_operand.vmem [shape: f32[1,128], index: 5, kind: input, shape index: {}]   ;;  %s702_s6 = inlined_call_operand.vmem [shape: f32[128,2], index: 6, kind: input, shape index: {}]   ;;  %s703_s7 = inlined_call_operand.vmem [shape: f32[1,2], index: 7, kind: input, shape index: {}]   ;;  %s704_s8 = inlined_call_operand.vmem [shape: f32[8,2], index: 8, kind: output, shape index: {}]  }
   0x1   :  { %s23_s28 = sshll.u32 %s487_s27, 4  ;;  %s24_s28 = int_to_ptr.vmem [resolvable:$true] %s23_s28 }
   0x2   :  { %s473_s29 = scalar_lea.vmem %s24_s28, 384  ;;  %p478_p1 = scmp.lt.s32.totalorder %s24_s28, %s24_s28 }
   0x3   :  { %p474_p0 = scmp.ne.s32.totalorder %s24_s28, %s473_s29  ;;  %p479_p2 = scmp.lt.s32.totalorder %s473_s29, %s473_s29 }
   0x5   :  { %p480_p3 = por %p479_p2, %p478_p1 }
   0x7   :  { %p481_p4 = pnand %p480_p3, %p474_p0 }
   0x9   :  { %484 = shalt.err (!%p481_p4)
}
   0xa   :  { %s488_s30 = smov 128   ;;  %s489_s9 = smov 8  }
   0xb   :  { %29 = dma.hbm_to_vmem [thread:$0]  %s698_s2, 384, %s24_s28, [#allocation4], %s488_s30, %s488_s30, %s489_s9  }
   0xc   :  { %485 = dma.done.wait [#allocation4], 384  }
   0xd   :  { %486 = vsyncadd [#allocation4], 4294966912  ;;  %v490_v0 = vmov 0.0   ;;  %vm491_vm0 = vmmov 0   ;;  %vm44_vm1 = vcmask 130048   ;;  %vm68_vm2 = vcmask 1043456  }
   0xe   :  { %380 = vmatprep.subr.mxu0 %v490_v0  ;;  %389 = vmatprep.subr.mxu1 %v490_v0  ;;  %v46_v1 = vld [vmem:[%s697_s1] sm:$0xff]  ;;  %v56_v3 = vld [vmem:[#allocation3 + $0x10] sm:$0xf]  ;;  %s492_s15 = smov 16   ;;  %v55_v4 = vld [vmem:[#allocation3 + $0x8] sm:$0xff]  ;;  %vm51_vm3 = vcmask 162944  }
   0xf   :  { %386 = vmatprep.mubr.msk.f32.mxu0 %vm491_vm0, %v490_v0  ;;  %421 = vmatprep.mubr.msk.f32.mxu1 %vm491_vm0, %v490_v0  ;;  %v43_v2 = vld [vmem:[%s696_s0] sm:$0xff]  ;;  %v158_v5 = vld [vmem:[%s700_s4 + $0x78] sm:$0xff]  ;;  %v54_v6 = vld [vmem:[#allocation3] sm:$0xff]  ;;  %vm64_vm4 = vcmask 162816   ;;  %vm330_vm5 = vcmask 15360  }
  0x10   :  { %48 = vrot.lane.b32.xlu0 %v46_v1, %s492_s15  ;;  %45 = vst.msk [vmem:[#allocation2] sm:$0xff] %vm44_vm1, %v43_v2  ;;  %381 = vmatpush3.msk.msra.mxu0 %vm68_vm2, %v56_v3  ;;  %v157_v7 = vld [vmem:[%s700_s4 + $0x70] sm:$0xff]  ;;  %v156_v8 = vld [vmem:[%s700_s4 + $0x68] sm:$0xff]  ;;  %v155_v9 = vld [vmem:[%s700_s4 + $0x60] sm:$0xff] }
  0x11   :  { %382 = vmatprep.subr.mxu0 %v490_v0  ;;  %390 = vmatpush3.msra.mxu1 %v158_v5  ;;  %v154_v10 = vld [vmem:[%s700_s4 + $0x58] sm:$0xff]  ;;  %v153_v11 = vld [vmem:[%s700_s4 + $0x50] sm:$0xff]  ;;  %v152_v12 = vld [vmem:[%s700_s4 + $0x48] sm:$0xff] }
  0x12   :  { %383 = vmatpush3.msra.mxu0 %v55_v4  ;;  %391 = vmatprep.subr.mxu1 %v490_v0  ;;  %v151_v13 = vld [vmem:[%s700_s4 + $0x40] sm:$0xff]  ;;  %v150_v14 = vld [vmem:[%s700_s4 + $0x38] sm:$0xff]  ;;  %v149_v15 = vld [vmem:[%s700_s4 + $0x30] sm:$0xff] }
  0x13   :  { %384 = vmatprep.subr.mxu0 %v490_v0  ;;  %392 = vmatpush3.msra.mxu1 %v157_v7  ;;  %v148_v16 = vld [vmem:[%s700_s4 + $0x28] sm:$0xff]  ;;  %v147_v17 = vld [vmem:[%s700_s4 + $0x20] sm:$0xff]  ;;  %v146_v18 = vld [vmem:[%s700_s4 + $0x18] sm:$0xff] }
  0x14   :  { %385 = vmatpush3.msra.mxu0 %v54_v6  ;;  %393 = vmatprep.subr.mxu1 %v490_v0  ;;  %v145_v21 = vld [vmem:[%s700_s4 + $0x10] sm:$0xff]  ;;  %v144_v22 = vld [vmem:[%s700_s4 + $0x8] sm:$0xff]  ;;  %v143_v23 = vld [vmem:[%s700_s4] sm:$0xff] }
  0x15   :  { %394 = vmatpush3.msra.mxu1 %v156_v8  ;;  %424 = vmatprep.subr.mxu0 %v490_v0  ;;  %v252_v24 = vld [vmem:[%s702_s6 + $0x78] sm:$0xff]  ;;  %v251_v25 = vld [vmem:[%s702_s6 + $0x70] sm:$0xff]  ;;  %v250_v26 = vld [vmem:[%s702_s6 + $0x68] sm:$0xff] }
  0x16   :  { %395 = vmatprep.subr.mxu1 %v490_v0  ;;  %v249_v27 = vld [vmem:[%s702_s6 + $0x60] sm:$0xff]  ;;  %v248_v28 = vld [vmem:[%s702_s6 + $0x58] sm:$0xff]  ;;  %v247_v29 = vld [vmem:[%s702_s6 + $0x50] sm:$0xff] }
  0x17   :  { %396 = vmatpush3.msra.mxu1 %v155_v9  ;;  %v246_v30 = vld [vmem:[%s702_s6 + $0x48] sm:$0xff]  ;;  %v245_v31 = vld [vmem:[%s702_s6 + $0x40] sm:$0xff]  ;;  %v244_v32 = vld [vmem:[%s702_s6 + $0x38] sm:$0xff] }
  0x18   :  { %397 = vmatprep.subr.mxu1 %v490_v0  ;;  %v243_v33 = vld [vmem:[%s702_s6 + $0x30] sm:$0xff]  ;;  %v242_v34 = vld [vmem:[%s702_s6 + $0x28] sm:$0xff]  ;;  %v241_v35 = vld [vmem:[%s702_s6 + $0x20] sm:$0xff] }
  0x19   :  { %398 = vmatpush3.msra.mxu1 %v154_v10  ;;  %v240_v36 = vld [vmem:[%s702_s6 + $0x18] sm:$0xff]  ;;  %v337_v37 = vld [vmem:[%s699_s3] ss:$0 sm:$0xff]  ;;  %v239_v42 = vld [vmem:[%s702_s6 + $0x10] sm:$0xff] }
  0x1a   :  { %399 = vmatprep.subr.mxu1 %v490_v0  ;;  %v238_v43 = vld [vmem:[%s702_s6 + $0x8] sm:$0xff]  ;;  %v237_v44 = vld [vmem:[%s702_s6] sm:$0xff] }
  0x1b   :  { %400 = vmatpush3.msra.mxu1 %v153_v11  ;;  %v340_v45 = vld [vmem:[%s701_s5] ss:$0 sm:$0xff] }
  0x1c   :  { %401 = vmatprep.subr.mxu1 %v490_v0  ;;  %v341_v50 = vld [vmem:[%s703_s7] ss:$0 sm:$0xff] }
  0x1d   :  { %402 = vmatpush3.msra.mxu1 %v152_v12 }
  0x1e   :  { %403 = vmatprep.subr.mxu1 %v490_v0 }
  0x1f   :  { %404 = vmatpush3.msra.mxu1 %v151_v13 }
  0x20   :  { %405 = vmatprep.subr.mxu1 %v490_v0 }
  0x21   :  { %406 = vmatpush3.msra.mxu1 %v150_v14 }
  0x22   :  { %407 = vmatprep.subr.mxu1 %v490_v0 }
  0x23   :  { %408 = vmatpush3.msra.mxu1 %v149_v15 }
  0x24   :  { %409 = vmatprep.subr.mxu1 %v490_v0 }
  0x25   :  { %410 = vmatpush3.msra.mxu1 %v148_v16 }
  0x26   :  { %411 = vmatprep.subr.mxu1 %v490_v0 }
  0x27   :  { %412 = vmatpush3.msra.mxu1 %v147_v17 }
  0x28   :  { %413 = vmatprep.subr.mxu1 %v490_v0 }
  0x29   :  { %414 = vmatpush3.msra.mxu1 %v146_v18 }
  0x2a   :  { %415 = vmatprep.subr.mxu1 %v490_v0 }
  0x2b   :  { %416 = vmatpush3.msra.mxu1 %v145_v21 }
  0x2c   :  { %417 = vmatprep.subr.mxu1 %v490_v0 }
  0x2d   :  { %418 = vmatpush3.msra.mxu1 %v144_v22 }
  0x2e   :  { %419 = vmatprep.subr.mxu1 %v490_v0 }
  0x2f   :  { %420 = vmatpush3.msra.mxu1 %v143_v23 }
  0x82   :  { %v49_v19 = vpop.permute.xlu0 %48 }
  0x83   :  { %52 = vst.msk [vmem:[#allocation2] sm:$0xff] %vm51_vm3, %v49_v19 }
  0x8a   :  { %v53_v20 = vld [vmem:[#allocation2] sm:$0xff] }
  0x8b   :  { %387 = vmatmul.mubr.msk.f32.vlgmr.msra.gmra.mxu0 %vm64_vm4, %v53_v20 }
  0x8c   :  { %456 = vmatprep.mubr.msk.f32.mxu0 %vm491_vm0, %v490_v0  ;;  %425 = vmatpush3.msra.mxu0 %v252_v24 }
  0x8d   :  { %426 = vmatprep.subr.mxu0 %v490_v0 }
  0x8e   :  { %427 = vmatpush3.msra.mxu0 %v251_v25 }
  0x8f   :  { %428 = vmatprep.subr.mxu0 %v490_v0 }
  0x90   :  { %429 = vmatpush3.msra.mxu0 %v250_v26 }
  0x91   :  { %430 = vmatprep.subr.mxu0 %v490_v0 }
  0x92   :  { %431 = vmatpush3.msra.mxu0 %v249_v27 }
  0x93   :  { %432 = vmatprep.subr.mxu0 %v490_v0 }
  0x94   :  { %433 = vmatpush3.msra.mxu0 %v248_v28 }
  0x95   :  { %434 = vmatprep.subr.mxu0 %v490_v0 }
  0x96   :  { %435 = vmatpush3.msra.mxu0 %v247_v29 }
  0x97   :  { %436 = vmatprep.subr.mxu0 %v490_v0 }
  0x98   :  { %437 = vmatpush3.msra.mxu0 %v246_v30 }
  0x99   :  { %438 = vmatprep.subr.mxu0 %v490_v0 }
  0x9a   :  { %439 = vmatpush3.msra.mxu0 %v245_v31 }
  0x9b   :  { %440 = vmatprep.subr.mxu0 %v490_v0 }
  0x9c   :  { %441 = vmatpush3.msra.mxu0 %v244_v32 }
  0x9d   :  { %442 = vmatprep.subr.mxu0 %v490_v0 }
  0x9e   :  { %443 = vmatpush3.msra.mxu0 %v243_v33 }
  0x9f   :  { %444 = vmatprep.subr.mxu0 %v490_v0 }
  0xa0   :  { %445 = vmatpush3.msra.mxu0 %v242_v34 }
  0xa1   :  { %446 = vmatprep.subr.mxu0 %v490_v0 }
  0xa2   :  { %447 = vmatpush3.msra.mxu0 %v241_v35 }
  0xa3   :  { %448 = vmatprep.subr.mxu0 %v490_v0 }
  0xa4   :  { %449 = vmatpush3.msra.mxu0 %v240_v36 }
  0xa5   :  { %450 = vmatprep.subr.mxu0 %v490_v0 }
  0xa6   :  { %451 = vmatpush3.msra.mxu0 %v239_v42 }
  0xa7   :  { %452 = vmatprep.subr.mxu0 %v490_v0 }
  0xa8   :  { %453 = vmatpush3.msra.mxu0 %v238_v43 }
  0xa9   :  { %454 = vmatprep.subr.mxu0 %v490_v0 }
  0xaa   :  { %455 = vmatpush3.msra.mxu0 %v237_v44 }
 0x14b   :  { %v138_v38 = vpop.f32.mrf.mxu0 }
 0x14c   :  { %v139_v39 = vadd.f32 %v337_v37, %v138_v38 }
 0x14d   :  { %v388_v40 = vpop.f32.mrf.mxu0 }
 0x14e   :  { %v142_v41 = vmax.f32 %v139_v39, 0.0 }
 0x150   :  { %422 = vmatmul.mubr.f32.vlgmr.msra.gmra.mxu1 %v142_v41 }
 0x210   :  { %v232_v46 = vpop.f32.mrf.mxu1 }
 0x211   :  { %v233_v47 = vadd.f32 %v340_v45, %v232_v46 }
 0x212   :  { %v423_v48 = vpop.f32.mrf.mxu1 }
 0x213   :  { %v236_v49 = vmax.f32 %v233_v47, 0.0 }
 0x215   :  { %457 = vmatmul.mubr.f32.vlgmr.msra.gmra.mxu0 %v236_v49 }
 0x2d5   :  { %v326_v51 = vpop.f32.mrf.mxu0 }
 0x2d6   :  { %v327_v52 = vadd.f32 %v341_v50, %v326_v51 }
 0x2d7   :  { %v458_v53 = vpop.f32.mrf.mxu0 }
 0x2d8   :  { %331 = vst.msk [vmem:[%s704_s8] sm:$0xff] %vm330_vm5, %v327_v52 }
 0x2d9   :  { %336 = vsyncpa [#allocation4], 1 }

// kernel: tpu_custom_call.1
= control target key start
LH: loop header
LB: loop body
LE: loop exit
PB: predicated region body
PF: predicated region fallthrough
CT: control target
= control target key end

     0   :  { %13 = vsyncpa [#allocation4], 0  ;;  %s487_s27 = smov [#allocation3]   ;;  %s696_s0 = inlined_call_operand.vmem [shape: f32[8,16], index: 0, kind: input, shape index: {}]   ;;  %s697_s1 = inlined_call_operand.vmem [shape: f32[8,4], index: 1, kind: input, shape index: {}]   ;;  %s698_s2 = inlined_call_operand.hbm [shape: f32[20,128], index: 2, kind: input, shape index: {}]   ;;  %s699_s3 = inlined_call_operand.vmem [shape: f32[1,128], index: 3, kind: input, shape index: {}]   ;;  %s700_s4 = inlined_call_operand.vmem [shape: f32[128,128], index: 4, kind: input, shape index: {}]   ;;  %s701_s5 = inlined_call_operand.vmem [shape: f32[1,128], index: 5, kind: input, shape index: {}]   ;;  %s702_s6 = inlined_call_operand.vmem [shape: f32[128,2], index: 6, kind: input, shape index: {}]   ;;  %s703_s7 = inlined_call_operand.vmem [shape: f32[1,2], index: 7, kind: input, shape index: {}]   ;;  %s704_s8 = inlined_call_operand.vmem [shape: f32[8,2], index: 8, kind: output, shape index: {}]  }
   0x1   :  { %s23_s28 = sshll.u32 %s487_s27, 4  ;;  %s24_s28 = int_to_ptr.vmem [resolvable:$true] %s23_s28 }
   0x2   :  { %s473_s29 = scalar_lea.vmem %s24_s28, 384  ;;  %p478_p1 = scmp.lt.s32.totalorder %s24_s28, %s24_s28 }
   0x3   :  { %p474_p0 = scmp.ne.s32.totalorder %s24_s28, %s473_s29  ;;  %p479_p2 = scmp.lt.s32.totalorder %s473_s29, %s473_s29 }
   0x5   :  { %p480_p3 = por %p479_p2, %p478_p1 }
   0x7   :  { %p481_p4 = pnand %p480_p3, %p474_p0 }
   0x9   :  { %484 = shalt.err (!%p481_p4)
}
   0xa   :  { %s488_s30 = smov 128   ;;  %s489_s9 = smov 8  }
   0xb   :  { %29 = dma.hbm_to_vmem [thread:$0]  %s698_s2, 384, %s24_s28, [#allocation4], %s488_s30, %s488_s30, %s489_s9  }
   0xc   :  { %485 = dma.done.wait [#allocation4], 384  }
   0xd   :  { %486 = vsyncadd [#allocation4], 4294966912  ;;  %v490_v0 = vmov 0.0   ;;  %vm491_vm0 = vmmov 0   ;;  %vm44_vm1 = vcmask 130048   ;;  %vm68_vm2 = vcmask 1043456  }
   0xe   :  { %380 = vmatprep.subr.mxu0 %v490_v0  ;;  %389 = vmatprep.subr.mxu1 %v490_v0  ;;  %v46_v1 = vld [vmem:[%s697_s1] sm:$0xff]  ;;  %v56_v3 = vld [vmem:[#allocation3 + $0x10] sm:$0xf]  ;;  %s492_s15 = smov 16   ;;  %v55_v4 = vld [vmem:[#allocation3 + $0x8] sm:$0xff]  ;;  %vm51_vm3 = vcmask 162944  }
   0xf   :  { %386 = vmatprep.mubr.msk.f32.mxu0 %vm491_vm0, %v490_v0  ;;  %421 = vmatprep.mubr.msk.f32.mxu1 %vm491_vm0, %v490_v0  ;;  %v43_v2 = vld [vmem:[%s696_s0] sm:$0xff]  ;;  %v158_v5 = vld [vmem:[%s700_s4 + $0x78] sm:$0xff]  ;;  %v54_v6 = vld [vmem:[#allocation3] sm:$0xff]  ;;  %vm64_vm4 = vcmask 162816   ;;  %vm330_vm5 = vcmask 15360  }
  0x10   :  { %48 = vrot.lane.b32.xlu0 %v46_v1, %s492_s15  ;;  %45 = vst.msk [vmem:[#allocation2] sm:$0xff] %vm44_vm1, %v43_v2  ;;  %381 = vmatpush3.msk.msra.mxu0 %vm68_vm2, %v56_v3  ;;  %v157_v7 = vld [vmem:[%s700_s4 + $0x70] sm:$0xff]  ;;  %v156_v8 = vld [vmem:[%s700_s4 + $0x68] sm:$0xff]  ;;  %v155_v9 = vld [vmem:[%s700_s4 + $0x60] sm:$0xff] }
  0x11   :  { %382 = vmatprep.subr.mxu0 %v490_v0  ;;  %390 = vmatpush3.msra.mxu1 %v158_v5  ;;  %v154_v10 = vld [vmem:[%s700_s4 + $0x58] sm:$0xff]  ;;  %v153_v11 = vld [vmem:[%s700_s4 + $0x50] sm:$0xff]  ;;  %v152_v12 = vld [vmem:[%s700_s4 + $0x48] sm:$0xff] }
  0x12   :  { %383 = vmatpush3.msra.mxu0 %v55_v4  ;;  %391 = vmatprep.subr.mxu1 %v490_v0  ;;  %v151_v13 = vld [vmem:[%s700_s4 + $0x40] sm:$0xff]  ;;  %v150_v14 = vld [vmem:[%s700_s4 + $0x38] sm:$0xff]  ;;  %v149_v15 = vld [vmem:[%s700_s4 + $0x30] sm:$0xff] }
  0x13   :  { %384 = vmatprep.subr.mxu0 %v490_v0  ;;  %392 = vmatpush3.msra.mxu1 %v157_v7  ;;  %v148_v16 = vld [vmem:[%s700_s4 + $0x28] sm:$0xff]  ;;  %v147_v17 = vld [vmem:[%s700_s4 + $0x20] sm:$0xff]  ;;  %v146_v18 = vld [vmem:[%s700_s4 + $0x18] sm:$0xff] }
  0x14   :  { %385 = vmatpush3.msra.mxu0 %v54_v6  ;;  %393 = vmatprep.subr.mxu1 %v490_v0  ;;  %v145_v21 = vld [vmem:[%s700_s4 + $0x10] sm:$0xff]  ;;  %v144_v22 = vld [vmem:[%s700_s4 + $0x8] sm:$0xff]  ;;  %v143_v23 = vld [vmem:[%s700_s4] sm:$0xff] }
  0x15   :  { %394 = vmatpush3.msra.mxu1 %v156_v8  ;;  %424 = vmatprep.subr.mxu0 %v490_v0  ;;  %v252_v24 = vld [vmem:[%s702_s6 + $0x78] sm:$0xff]  ;;  %v251_v25 = vld [vmem:[%s702_s6 + $0x70] sm:$0xff]  ;;  %v250_v26 = vld [vmem:[%s702_s6 + $0x68] sm:$0xff] }
  0x16   :  { %395 = vmatprep.subr.mxu1 %v490_v0  ;;  %v249_v27 = vld [vmem:[%s702_s6 + $0x60] sm:$0xff]  ;;  %v248_v28 = vld [vmem:[%s702_s6 + $0x58] sm:$0xff]  ;;  %v247_v29 = vld [vmem:[%s702_s6 + $0x50] sm:$0xff] }
  0x17   :  { %396 = vmatpush3.msra.mxu1 %v155_v9  ;;  %v246_v30 = vld [vmem:[%s702_s6 + $0x48] sm:$0xff]  ;;  %v245_v31 = vld [vmem:[%s702_s6 + $0x40] sm:$0xff]  ;;  %v244_v32 = vld [vmem:[%s702_s6 + $0x38] sm:$0xff] }
  0x18   :  { %397 = vmatprep.subr.mxu1 %v490_v0  ;;  %v243_v33 = vld [vmem:[%s702_s6 + $0x30] sm:$0xff]  ;;  %v242_v34 = vld [vmem:[%s702_s6 + $0x28] sm:$0xff]  ;;  %v241_v35 = vld [vmem:[%s702_s6 + $0x20] sm:$0xff] }
  0x19   :  { %398 = vmatpush3.msra.mxu1 %v154_v10  ;;  %v240_v36 = vld [vmem:[%s702_s6 + $0x18] sm:$0xff]  ;;  %v337_v37 = vld [vmem:[%s699_s3] ss:$0 sm:$0xff]  ;;  %v239_v42 = vld [vmem:[%s702_s6 + $0x10] sm:$0xff] }
  0x1a   :  { %399 = vmatprep.subr.mxu1 %v490_v0  ;;  %v238_v43 = vld [vmem:[%s702_s6 + $0x8] sm:$0xff]  ;;  %v237_v44 = vld [vmem:[%s702_s6] sm:$0xff] }
  0x1b   :  { %400 = vmatpush3.msra.mxu1 %v153_v11  ;;  %v340_v45 = vld [vmem:[%s701_s5] ss:$0 sm:$0xff] }
  0x1c   :  { %401 = vmatprep.subr.mxu1 %v490_v0  ;;  %v341_v50 = vld [vmem:[%s703_s7] ss:$0 sm:$0xff] }
  0x1d   :  { %402 = vmatpush3.msra.mxu1 %v152_v12 }
  0x1e   :  { %403 = vmatprep.subr.mxu1 %v490_v0 }
  0x1f   :  { %404 = vmatpush3.msra.mxu1 %v151_v13 }
  0x20   :  { %405 = vmatprep.subr.mxu1 %v490_v0 }
  0x21   :  { %406 = vmatpush3.msra.mxu1 %v150_v14 }
  0x22   :  { %407 = vmatprep.subr.mxu1 %v490_v0 }
  0x23   :  { %408 = vmatpush3.msra.mxu1 %v149_v15 }
  0x24   :  { %409 = vmatprep.subr.mxu1 %v490_v0 }
  0x25   :  { %410 = vmatpush3.msra.mxu1 %v148_v16 }
  0x26   :  { %411 = vmatprep.subr.mxu1 %v490_v0 }
  0x27   :  { %412 = vmatpush3.msra.mxu1 %v147_v17 }
  0x28   :  { %413 = vmatprep.subr.mxu1 %v490_v0 }
  0x29   :  { %414 = vmatpush3.msra.mxu1 %v146_v18 }
  0x2a   :  { %415 = vmatprep.subr.mxu1 %v490_v0 }
  0x2b   :  { %416 = vmatpush3.msra.mxu1 %v145_v21 }
  0x2c   :  { %417 = vmatprep.subr.mxu1 %v490_v0 }
  0x2d   :  { %418 = vmatpush3.msra.mxu1 %v144_v22 }
  0x2e   :  { %419 = vmatprep.subr.mxu1 %v490_v0 }
  0x2f   :  { %420 = vmatpush3.msra.mxu1 %v143_v23 }
  0x82   :  { %v49_v19 = vpop.permute.xlu0 %48 }
  0x83   :  { %52 = vst.msk [vmem:[#allocation2] sm:$0xff] %vm51_vm3, %v49_v19 }
  0x8a   :  { %v53_v20 = vld [vmem:[#allocation2] sm:$0xff] }
  0x8b   :  { %387 = vmatmul.mubr.msk.f32.vlgmr.msra.gmra.mxu0 %vm64_vm4, %v53_v20 }
  0x8c   :  { %456 = vmatprep.mubr.msk.f32.mxu0 %vm491_vm0, %v490_v0  ;;  %425 = vmatpush3.msra.mxu0 %v252_v24 }
  0x8d   :  { %426 = vmatprep.subr.mxu0 %v490_v0 }
  0x8e   :  { %427 = vmatpush3.msra.mxu0 %v251_v25 }
  0x8f   :  { %428 = vmatprep.subr.mxu0 %v490_v0 }
  0x90   :  { %429 = vmatpush3.msra.mxu0 %v250_v26 }
  0x91   :  { %430 = vmatprep.subr.mxu0 %v490_v0 }
  0x92   :  { %431 = vmatpush3.msra.mxu0 %v249_v27 }
  0x93   :  { %432 = vmatprep.subr.mxu0 %v490_v0 }
  0x94   :  { %433 = vmatpush3.msra.mxu0 %v248_v28 }
  0x95   :  { %434 = vmatprep.subr.mxu0 %v490_v0 }
  0x96   :  { %435 = vmatpush3.msra.mxu0 %v247_v29 }
  0x97   :  { %436 = vmatprep.subr.mxu0 %v490_v0 }
  0x98   :  { %437 = vmatpush3.msra.mxu0 %v246_v30 }
  0x99   :  { %438 = vmatprep.subr.mxu0 %v490_v0 }
  0x9a   :  { %439 = vmatpush3.msra.mxu0 %v245_v31 }
  0x9b   :  { %440 = vmatprep.subr.mxu0 %v490_v0 }
  0x9c   :  { %441 = vmatpush3.msra.mxu0 %v244_v32 }
  0x9d   :  { %442 = vmatprep.subr.mxu0 %v490_v0 }
  0x9e   :  { %443 = vmatpush3.msra.mxu0 %v243_v33 }
  0x9f   :  { %444 = vmatprep.subr.mxu0 %v490_v0 }
  0xa0   :  { %445 = vmatpush3.msra.mxu0 %v242_v34 }
  0xa1   :  { %446 = vmatprep.subr.mxu0 %v490_v0 }
  0xa2   :  { %447 = vmatpush3.msra.mxu0 %v241_v35 }
  0xa3   :  { %448 = vmatprep.subr.mxu0 %v490_v0 }
  0xa4   :  { %449 = vmatpush3.msra.mxu0 %v240_v36 }
  0xa5   :  { %450 = vmatprep.subr.mxu0 %v490_v0 }
  0xa6   :  { %451 = vmatpush3.msra.mxu0 %v239_v42 }
  0xa7   :  { %452 = vmatprep.subr.mxu0 %v490_v0 }
  0xa8   :  { %453 = vmatpush3.msra.mxu0 %v238_v43 }
  0xa9   :  { %454 = vmatprep.subr.mxu0 %v490_v0 }
  0xaa   :  { %455 = vmatpush3.msra.mxu0 %v237_v44 }
 0x14b   :  { %v138_v38 = vpop.f32.mrf.mxu0 }
 0x14c   :  { %v139_v39 = vadd.f32 %v337_v37, %v138_v38 }
 0x14d   :  { %v388_v40 = vpop.f32.mrf.mxu0 }
 0x14e   :  { %v142_v41 = vmax.f32 %v139_v39, 0.0 }
 0x150   :  { %422 = vmatmul.mubr.f32.vlgmr.msra.gmra.mxu1 %v142_v41 }
 0x210   :  { %v232_v46 = vpop.f32.mrf.mxu1 }
 0x211   :  { %v233_v47 = vadd.f32 %v340_v45, %v232_v46 }
 0x212   :  { %v423_v48 = vpop.f32.mrf.mxu1 }
 0x213   :  { %v236_v49 = vmax.f32 %v233_v47, 0.0 }
 0x215   :  { %457 = vmatmul.mubr.f32.vlgmr.msra.gmra.mxu0 %v236_v49 }
 0x2d5   :  { %v326_v51 = vpop.f32.mrf.mxu0 }
 0x2d6   :  { %v327_v52 = vadd.f32 %v341_v50, %v326_v51 }
 0x2d7   :  { %v458_v53 = vpop.f32.mrf.mxu0 }
 0x2d8   :  { %331 = vst.msk [vmem:[%s704_s8] sm:$0xff] %vm330_vm5, %v327_v52 }
 0x2d9   :  { %336 = vsyncpa [#allocation4], 1 }

</bundles_post_ra>
